<compile_context>
chip_gen: v7x
topology: tpu7x:2x2x1
jax: 0.10.0
libtpu: 0.0.40
codegen_flags: <defaults>
</compile_context>

<pallas_src>
import functools

import jax
import jax.numpy as jnp
from jax.experimental import pallas as pl
from jax.experimental.pallas import tpu as pltpu


_VMEM_BUDGET = 12 * 1024 * 1024          # keep under v5e's 16 MiB scoped default
_RESIDENT_WEIGHT_LIMIT = 6 * 1024 * 1024  # un-tile N when weight+bias fit here


def _round_up(x, m):
    return ((x + m - 1) // m) * m


def _pick_tm(m8, k, n_tile, out_bytes, resident_bytes, tm_max):
    """Largest tm (mult. of 8, <= tm_max) keeping the working set in budget."""
    tm = _round_up(min(tm_max, m8), 8)
    while tm > 8:
        work = (resident_bytes
                + 2 * tm * k * 2                # double-buffered bf16 patch tile
                + 2 * tm * n_tile * out_bytes)  # double-buffered output tile
        if work <= _VMEM_BUDGET:
            break
        tm = _round_up(tm // 2, 8)
    return max(tm, 8)


def _balance_grid_m(m8, tm):
    """Round grid_m up to an even count (v7x megacore) and rebalance tm."""
    grid_m = pl.cdiv(m8, tm)
    if grid_m > 1:
        grid_m = _round_up(grid_m, 2)
        tm = _round_up(pl.cdiv(m8, grid_m), 8)
    return grid_m, tm


# ---------------------------------------------------------------------------
# Kernel body (shared by both grid layouts): one (tm, tn) output tile =
# (tm, K) patches @ (K, tn) weight on the MXU (f32 accumulation), VPU bias
# add, cast on the store.
# ---------------------------------------------------------------------------
def patch_embed_kernel(x_ref, w_ref, b_ref, o_ref):
    acc = jnp.dot(x_ref[...], w_ref[...], preferred_element_type=jnp.float32)
    o_ref[...] = (acc + b_ref[...]).astype(o_ref.dtype)


def patch_embed_matmul(patches, weight, bias, *, out_dtype=jnp.float32,
                       tm_max=1024):
    """patches: (M, K) bf16, weight: (K, N) bf16, bias: (1, N) f32.

    K and N must be multiples of 128 (zero-padded by the caller).  Returns
    (M, N) out_dtype.  M padding is handled internally.
    """
    M, K = patches.shape
    _, N = weight.shape
    out_bytes = jnp.dtype(out_dtype).itemsize
    m8 = _round_up(M, 8)

    w_bytes = K * N * 2 + N * 4
    if w_bytes <= _RESIDENT_WEIGHT_LIMIT:
        # ---- Fast path: N un-tiled.  Weight + bias stay resident in VMEM
        # across the whole run; patches stream exactly once; lane-dense out.
        tm = _pick_tm(m8, K, N, out_bytes, w_bytes, tm_max)
        grid_m, tm = _balance_grid_m(m8, tm)
        m_total = grid_m * tm
        if m_total != M:
            patches = jnp.pad(patches, ((0, m_total - M), (0, 0)))

        cost = pl.CostEstimate(
            flops=2 * m_total * K * N,
            transcendentals=0,
            bytes_accessed=(m_total * K * 2 + K * N * 2 + N * 4
                            + m_total * N * out_bytes),
        )
        out = pl.pallas_call(
            patch_embed_kernel,
            out_shape=jax.ShapeDtypeStruct((m_total, N), out_dtype),
            grid=(grid_m,),
            in_specs=[
                pl.BlockSpec((tm, K), lambda i: (i, 0)),
                pl.BlockSpec((K, N), lambda i: (0, 0)),   # resident
                pl.BlockSpec((1, N), lambda i: (0, 0)),   # resident
            ],
            out_specs=pl.BlockSpec((tm, N), lambda i: (i, 0)),
            compiler_params=pltpu.CompilerParams(
                dimension_semantics=("parallel",)),
            cost_estimate=cost,
        )(patches, weight, bias)
        return out[:M]

    # ---- Fallback: very large embed dim.  M outer / N inner so the big
    # streaming patch tile is the operand kept resident across the inner N
    # sweep; only the tiny (K, tn) weight is re-read per M tile.
    tn = 512 if K <= 2048 else 256            # 256-multiple for v6e/v7x MXU
    n_total = _round_up(N, tn)
    if n_total != N:
        weight = jnp.pad(weight, ((0, 0), (0, n_total - N)))
        bias = jnp.pad(bias, ((0, 0), (0, n_total - N)))
    grid_n = n_total // tn

    resident = 2 * K * tn * 2 + 2 * tn * 4    # double-buffered weight + bias
    tm = _pick_tm(m8, K, tn, out_bytes, resident, tm_max)
    grid_m, tm = _balance_grid_m(m8, tm)
    m_total = grid_m * tm
    if m_total != M:
        patches = jnp.pad(patches, ((0, m_total - M), (0, 0)))

    cost = pl.CostEstimate(
        flops=2 * m_total * K * n_total,
        transcendentals=0,
        bytes_accessed=(m_total * K * 2 + grid_m * (K * n_total * 2 + n_total * 4)
                        + m_total * n_total * out_bytes),
    )
    out = pl.pallas_call(
        patch_embed_kernel,
        out_shape=jax.ShapeDtypeStruct((m_total, n_total), out_dtype),
        grid=(grid_m, grid_n),                # M outer, N inner
        in_specs=[
            pl.BlockSpec((tm, K), lambda i, j: (i, 0)),   # resident over j
            pl.BlockSpec((K, tn), lambda i, j: (0, j)),
            pl.BlockSpec((1, tn), lambda i, j: (0, j)),
        ],
        out_specs=pl.BlockSpec((tm, tn), lambda i, j: (i, j)),
        compiler_params=pltpu.CompilerParams(
            dimension_semantics=("parallel", "parallel")),
        cost_estimate=cost,
    )(patches, weight, bias)
    return out[:M, :N]


def patch_embed_forward(x, conv_w, conv_b, patch_size, out_dtype=jnp.float32):
    """x: (B, C, H, W) NCHW f32.  conv_w: (E, C, p, p) f32, conv_b: (E,) f32.

    Returns (B, num_patches, E) out_dtype, matching PatchEmbed.forward:
      Conv2d(kernel=stride=p)(x).flatten(2).transpose(1, 2).
    """
    B, C, H, W = x.shape
    p = patch_size
    E = conv_w.shape[0]
    gh, gw = H // p, W // p
    M = B * gh * gw
    K = C * p * p

    # Glue: patch extraction fused with the bf16 downcast (half-width HBM
    # pass).  K flatten order is (c, dh, dw), matching conv_w's (E, C, p, p).
    # TODO(synk): NHWC ingest (or an in-kernel row gather) would remove this
    # extra HBM pre-pass entirely.
    xb = x.astype(jnp.bfloat16)
    patches = xb.reshape(B, C, gh, p, gw, p)
    patches = patches.transpose(0, 2, 4, 1, 3, 5)
    patches = patches.reshape(M, K)

    # Pad K and E up to tile-aligned multiples of 128 (zero padding is exact).
    k_pad = _round_up(max(K, 128), 128)
    n_pad = _round_up(max(E, 128), 128)

    w_mat = conv_w.reshape(E, K).T.astype(jnp.bfloat16)            # (K, E)
    w_mat = jnp.pad(w_mat, ((0, k_pad - K), (0, n_pad - E)))
    if k_pad != K:
        patches = jnp.pad(patches, ((0, 0), (0, k_pad - K)))
    bias = jnp.pad(conv_b.astype(jnp.float32), (0, n_pad - E)).reshape(1, n_pad)

    out = patch_embed_matmul(patches, w_mat, bias, out_dtype=out_dtype)
    out = out[:, :E]
    return out.reshape(B, gh * gw, E)


if __name__ == "__main__":
    # Small shapes consistent with the module: img_size=16, patch_size=4,
    # in_chans=4, embed_dim=32 -> num_patches = 16.
    B, C, H, W = 2, 4, 16, 16
    patch_size = 4
    embed_dim = 32

    key = jax.random.PRNGKey(0)
    kx, kw, kb = jax.random.split(key, 3)

    x = jax.random.normal(kx, (B, C, H, W), dtype=jnp.float32)
    # Deterministic synthetic Conv2d params (same shapes as nn.Conv2d(C, E, p, p)).
    conv_w = jax.random.normal(kw, (embed_dim, C, patch_size, patch_size),
                               dtype=jnp.float32) * 0.02
    conv_b = jax.random.normal(kb, (embed_dim,), dtype=jnp.float32) * 0.02

    # Reference: strided conv on the same bf16-rounded operands the kernel
    # consumes (f32 bias / accumulation), then flatten(2).transpose(1, 2).
    x_q = x.astype(jnp.bfloat16).astype(jnp.float32)
    w_q = conv_w.astype(jnp.bfloat16).astype(jnp.float32)
    ref = jax.lax.conv_general_dilated(
        x_q, w_q, window_strides=(patch_size, patch_size), padding="VALID",
        dimension_numbers=("NCHW", "OIHW", "NCHW"))
    ref = ref + conv_b.reshape(1, embed_dim, 1, 1)
    ref = ref.reshape(B, embed_dim, -1).transpose(0, 2, 1)

    num_patches = (H // patch_size) * (W // patch_size)

    # f32 output (default): tight check.
    fwd_f32 = jax.jit(functools.partial(patch_embed_forward,
                                        patch_size=patch_size,
                                        out_dtype=jnp.float32))
    out_f32 = jax.block_until_ready(fwd_f32(x, conv_w, conv_b))
    assert out_f32.shape == (B, num_patches, embed_dim)
    assert jnp.allclose(out_f32, ref, atol=2e-3, rtol=2e-3), (
        float(jnp.max(jnp.abs(out_f32 - ref))))

    # bf16 output (halved HBM write path): looser check.
    fwd_bf16 = jax.jit(functools.partial(patch_embed_forward,
                                         patch_size=patch_size,
                                         out_dtype=jnp.bfloat16))
    out_bf16 = jax.block_until_ready(fwd_bf16(x, conv_w, conv_b))
    assert out_bf16.dtype == jnp.bfloat16
    assert out_bf16.shape == (B, num_patches, embed_dim)
    assert jnp.allclose(out_bf16.astype(jnp.float32), ref,
                        atol=1e-2, rtol=2e-2), (
        float(jnp.max(jnp.abs(out_bf16.astype(jnp.float32) - ref))))

    print("KERNEL_OK")
</pallas_src>

<mosaic_0001>
module attributes {stable_mosaic.version = 11 : i64} {
  func.func @patch_embed_kernel(%arg0: i32, %arg1: memref<32x128xbf16, #tpu.memory_space<vmem>>, %arg2: memref<128x128xbf16, #tpu.memory_space<vmem>>, %arg3: memref<1x128xf32, #tpu.memory_space<vmem>>, %arg4: memref<32x128xf32, #tpu.memory_space<vmem>>) attributes {dimension_semantics = [#tpu.dimension_semantics<parallel>], iteration_bounds = array<i64: 1>, scalar_prefetch = 0 : i64, scratch_operands = 0 : i64, tpu.core_type = #tpu.core_type<tc>, window_params = [{transform_indices = @transform_0, window_bounds = array<i64: 32, 128>}, {pipeline_mode = #tpu.pipeline_mode<synchronous>, transform_indices = @transform_1, window_bounds = array<i64: 128, 128>}, {pipeline_mode = #tpu.pipeline_mode<synchronous>, transform_indices = @transform_2, window_bounds = array<i64: 1, 128>}, {transform_indices = @transform_3, window_bounds = array<i64: 32, 128>}]} {
    %c0 = arith.constant 0 : index
    %c0_0 = arith.constant 0 : index
    %0 = vector.load %arg1[%c0, %c0_0] : memref<32x128xbf16, #tpu.memory_space<vmem>>, vector<32x128xbf16>
    %c0_1 = arith.constant 0 : index
    %c0_2 = arith.constant 0 : index
    %1 = vector.load %arg2[%c0_1, %c0_2] : memref<128x128xbf16, #tpu.memory_space<vmem>>, vector<128x128xbf16>
    %cst = arith.constant dense<0.000000e+00> : vector<32x128xf32>
    %2 = tpu.matmul %0, %1, %cst {dimension_numbers = #tpu.dot_dimension_numbers<[1], [0], [0], [1], [0, 0, 1, 1], [], []>} : vector<32x128xbf16>, vector<128x128xbf16>, vector<32x128xf32> -> vector<32x128xf32>
    %c0_3 = arith.constant 0 : index
    %c0_4 = arith.constant 0 : index
    %3 = vector.load %arg3[%c0_3, %c0_4] : memref<1x128xf32, #tpu.memory_space<vmem>>, vector<1x128xf32>
    %4 = vector.broadcast %3 : vector<1x128xf32> to vector<32x128xf32>
    %5 = arith.addf %2, %4 : vector<32x128xf32>
    %c0_5 = arith.constant 0 : index
    %c0_6 = arith.constant 0 : index
    %6 = vector.load %arg4[%c0_5, %c0_6] : memref<32x128xf32, #tpu.memory_space<vmem>>, vector<32x128xf32>
    tpu.vector_store %arg4[%c0_5, %c0_6], %5 {strides = array<i32>} : memref<32x128xf32, #tpu.memory_space<vmem>>, vector<32x128xf32>,
    return
  }
  func.func @transform_0(%arg0: i32) -> (i32, i32) {
    %c0_i32 = arith.constant 0 : i32
    %c0_i32_0 = arith.constant 0 : i32
    return %arg0, %c0_i32 : i32, i32
  }
  func.func @transform_1(%arg0: i32) -> (i32, i32) {
    %c0_i32 = arith.constant 0 : i32
    %c0_i32_0 = arith.constant 0 : i32
    %c0_i32_1 = arith.constant 0 : i32
    return %c0_i32, %c0_i32_0 : i32, i32
  }
  func.func @transform_2(%arg0: i32) -> (i32, i32) {
    %c0_i32 = arith.constant 0 : i32
    %c0_i32_0 = arith.constant 0 : i32
    %c0_i32_1 = arith.constant 0 : i32
    return %c0_i32, %c0_i32_0 : i32, i32
  }
  func.func @transform_3(%arg0: i32) -> (i32, i32) {
    %c0_i32 = arith.constant 0 : i32
    %c0_i32_0 = arith.constant 0 : i32
    return %arg0, %c0_i32 : i32, i32
  }
}

</mosaic_0001>

<bundles_post_ra>
// kernel: patch_embed_forward.1
= control target key start
LH: loop header
LB: loop body
LE: loop exit
PB: predicated region body
PF: predicated region fallthrough
CT: control target
= control target key end

     0   :  { %s318_s0 = inlined_call_operand.vmem [shape: bf16[32,128], index: 0, kind: input, shape index: {}]   ;;  %s319_s1 = inlined_call_operand.vmem [shape: bf16[128,128], index: 1, kind: input, shape index: {}]   ;;  %s320_s2 = inlined_call_operand.vmem [shape: f32[1,128], index: 2, kind: input, shape index: {}]   ;;  %s321_s3 = inlined_call_operand.hbm [shape: f32[32,128], index: 3, kind: output, shape index: {}]  }
   0x1   :  { %v216_v0 = vld [vmem:[%s319_s1] sm:$0xff]   ;;  %v217_v1 = vld [vmem:[%s319_s1 + $0x8] sm:$0xff]   ;;  %v218_v2 = vld [vmem:[%s319_s1 + $0x10] sm:$0xff]  }
   0x2   :  { %193 = vmatprep.subr.bf16.mxu0 %v216_v0  ;;  %v219_v3 = vld [vmem:[%s319_s1 + $0x18] sm:$0xff]   ;;  %v224_v4 = vld [vmem:[%s318_s0] sm:$0xff]  }
   0x3   :  { %194 = vmatpush3.bf16.msra.mxu0 %v216_v0  ;;  %209 = vmatprep.mubr.bf16.mxu0 %v224_v4 }
   0x4   :  { %195 = vmatprep.subr.bf16.mxu0 %v217_v1 }
   0x7   :  { %196 = vmatpush3.bf16.msra.mxu0 %v217_v1 }
   0x8   :  { %197 = vmatprep.subr.bf16.mxu0 %v218_v2 }
   0x9   :  { %8 = vsyncpa [#allocation3], 0  ;;  %v220_v5 = vld [vmem:[%s319_s1 + $0x20] sm:$0xff]   ;;  %v221_v6 = vld [vmem:[%s319_s1 + $0x28] sm:$0xff]   ;;  %s250_s7 = smov [#allocation2]  }
   0xa   :  { %v222_v7 = vld [vmem:[%s319_s1 + $0x30] sm:$0xff]   ;;  %v223_v8 = vld [vmem:[%s319_s1 + $0x38] sm:$0xff]   ;;  %v225_v9 = vld [vmem:[%s318_s0 + $0x8] sm:$0xff]   ;;  %s161_s8 = sshll.u32 %s250_s7, 4  ;;  %s162_s8 = int_to_ptr.vmem [resolvable:$true] %s161_s8 }
   0xb   :  { %198 = vmatpush3.bf16.msra.mxu0 %v218_v2  ;;  %v172_v10 = vld [vmem:[%s320_s2] ss:$0 sm:$0xff]  ;;  %s226_s0 = scalar_lea.vmem %s162_s8, 512  ;;  %p231_p1 = scmp.lt.s32.totalorder %s162_s8, %s162_s8 }
   0xc   :  { %199 = vmatprep.subr.bf16.mxu0 %v219_v3  ;;  %p227_p0 = scmp.ne.s32.totalorder %s162_s8, %s226_s0  ;;  %p232_p2 = scmp.lt.s32.totalorder %s226_s0, %s226_s0 }
   0xe   :  { %p233_p3 = por %p232_p2, %p231_p1 }
   0xf   :  { %200 = vmatpush3.bf16.msra.mxu0 %v219_v3 }
  0x10   :  { %201 = vmatprep.subr.bf16.mxu0 %v220_v5  ;;  %p234_p4 = pnand %p233_p3, %p227_p0 }
  0x13   :  { %202 = vmatpush3.bf16.msra.mxu0 %v220_v5 }
  0x14   :  { %203 = vmatprep.subr.bf16.mxu0 %v221_v6 }
  0x17   :  { %204 = vmatpush3.bf16.msra.mxu0 %v221_v6 }
  0x18   :  { %205 = vmatprep.subr.bf16.mxu0 %v222_v7 }
  0x1b   :  { %206 = vmatpush3.bf16.msra.mxu0 %v222_v7 }
  0x1c   :  { %207 = vmatprep.subr.bf16.mxu0 %v223_v8 }
  0x1f   :  { %208 = vmatpush3.bf16.msra.mxu0 %v223_v8 }
  0x22   :  { %210 = vmatmul.mubr.bf16.vlgmr.msra.gmra.mrb[0].mxu0 %v225_v9 }
  0xf5   :  { %v211_v11 = vpop.f32.mrb[0].mxu0 }
  0xf6   :  { %v146_v12 = vadd.f32 %v211_v11, %v172_v10  ;;  %v137_v13 = vpop.f32.mrb[1].mxu0 }
  0xf7   :  { %v138_v14 = vadd.f32 %v172_v10, %v137_v13  ;;  %v212_v15 = vpop.f32.mrb[2].mxu0 }
  0xf8   :  { %154 = vst [vmem:[#allocation2 + $0x10] sm:$0xff] %v146_v12  ;;  %v149_v16 = vadd.f32 %v212_v15, %v172_v10  ;;  %v140_v17 = vpop.f32.mrb[3].mxu0 }
  0xf9   :  { %152 = vst [vmem:[#allocation2] sm:$0xff] %v138_v14  ;;  %v141_v18 = vadd.f32 %v172_v10, %v140_v17 }
  0xfa   :  { %155 = vst [vmem:[#allocation2 + $0x18] sm:$0xff] %v149_v16 }
  0xfb   :  { %153 = vst [vmem:[#allocation2 + $0x8] sm:$0xff] %v141_v18 }
  0xfc   :  { %237 = shalt.err (!%p234_p4)
}
  0xfd   :  { %s238_s9 = scalar_lea.hbm %s321_s3, 512 }
  0xfe   :  { %p239_p5 = scmp.ne.s32.totalorder %s321_s3, %s238_s9  ;;  %p242_p6 = scmp.lt.u32.totalorder %s238_s9, %s321_s3 }
 0x100   :  { %p244_p7 = pnand %p242_p6, %p239_p5 }
 0x102   :  { %247 = shalt.err (!%p244_p7)
}
 0x103   :  { %s251_s14 = smov 128   ;;  %s252_s15 = smov 8  }
 0x104   :  { %167 = dma.vmem_to_hbm [thread:$0]  %s162_s8, 512, %s321_s3, [#allocation3], %s251_s14, %s251_s14, %s252_s15  }
 0x105   :  { %248 = dma.done.wait [#allocation3], 512  }
 0x106   :  { %249 = vsyncadd [#allocation3], 4294966784 }
 0x107   :  { %171 = vsyncpa [#allocation3], 1 }

</bundles_post_ra>
